<compile_context>
chip_gen: v7x
topology: tpu7x:2x2x1
jax: 0.10.0
libtpu: 0.0.40
codegen_flags: <defaults>
</compile_context>

<pallas_src>
import functools
import math

import jax
import jax.numpy as jnp
from jax.experimental import pallas as pl
from jax.experimental.pallas import tpu as pltpu

LN_EPS = 1e-5
LEAKY_SLOPE = 0.01  # PyTorch nn.LeakyReLU default negative_slope


def _round_up(x, m):
    return ((x + m - 1) // m) * m


def _leaky_relu(h):
    return jnp.where(h >= 0, h, LEAKY_SLOPE * h)


def _layernorm(h, gamma, beta, mask, inv_n):
    # Two-pass LayerNorm (PyTorch semantics: biased variance, eps in rsqrt).
    # Pad lanes of h are exactly 0 (zero-padded weights/biases), so the plain
    # sum over all padded lanes equals the sum over the true n lanes; the
    # centered values are masked before squaring so pad lanes don't pollute
    # the variance. Pad lanes of the result are 0 (gamma=beta=0 there).
    mean = jnp.sum(h, axis=-1, keepdims=True) * inv_n
    d = (h - mean) * mask
    var = jnp.sum(d * d, axis=-1, keepdims=True) * inv_n
    inv = jax.lax.rsqrt(var + LN_EPS)
    return d * inv * gamma + beta


def cnn_kernel(x_ref, w1_ref, w2_ref, w3_ref, vec_ref, b3_ref, o_ref, *, inv_n):
    # vec_ref rows (f32): 0=b1, 1=gamma1, 2=beta1, 3=b2, 4=gamma2, 5=beta2,
    #                     6=lane mask (1 on true channels, 0 on pad lanes).
    vecs = vec_ref[...]
    b1, g1, be1 = vecs[0:1, :], vecs[1:2, :], vecs[2:3, :]
    b2, g2, be2 = vecs[3:4, :], vecs[4:5, :], vecs[5:6, :]
    mask = vecs[6:7, :]

    # Stream x in its native dtype; cast to bf16 on the VPU (plenty of slack).
    x = x_ref[...].astype(jnp.bfloat16)

    # Linear 1 (MXU bf16 -> f32 acc) + LayerNorm + LeakyReLU (f32 VPU).
    h = jnp.dot(x, w1_ref[...], preferred_element_type=jnp.float32) + b1
    h = _leaky_relu(_layernorm(h, g1, be1, mask, inv_n))

    # Linear 2.
    h = jnp.dot(h.astype(jnp.bfloat16), w2_ref[...],
                preferred_element_type=jnp.float32) + b2
    h = _leaky_relu(_layernorm(h, g2, be2, mask, inv_n))

    # Flatten(start_dim=1) is identity here (time_len == 1).
    # Classifier into a lane-dense 128-wide slab; bf16 writeback.
    out = jnp.dot(h.astype(jnp.bfloat16), w3_ref[...],
                  preferred_element_type=jnp.float32) + b3_ref[...]
    o_ref[...] = out.astype(o_ref.dtype)


@functools.partial(jax.jit,
                   static_argnames=("num_class", "base_channel", "block_b"))
def cnn_forward(x, params, *, num_class, base_channel, block_b=1024):
    w1, w2, w3, vecs, b3 = params
    B, num_seq = x.shape
    ncp = w3.shape[1]  # lane-dense padded class count (multiple of 128)

    # --- batch-tile selection -------------------------------------------
    # Keep the double-buffered x tile + out tile + resident weights under a
    # conservative budget (default scoped VMEM is 16 MiB on v5e) so no
    # vmem_limit_bytes override is needed on any generation.
    w_bytes = (w1.size + w2.size + w3.size) * 2 + (vecs.size + b3.size) * 4
    bytes_per_row = 2 * (num_seq * x.dtype.itemsize + ncp * 2)
    budget = 12 * 1024 * 1024
    tm_cap = max(16, ((budget - w_bytes) // bytes_per_row) // 16 * 16)

    tm_target = max(16, min(block_b, tm_cap))
    num_tiles = pl.cdiv(B, tm_target)
    # v7x megacore: with a "parallel" batch axis, >=2 grid steps lets both
    # TensorCores work; only worth it when each half is still a big tile.
    if num_tiles == 1 and B >= 512:
        num_tiles = 2
    # Balance tiles over the batch; sublane-align (16 for packed bf16 out).
    tm = _round_up(pl.cdiv(B, num_tiles), 16)

    # No wrapper-side batch padding: the edge tile's out-of-bounds rows are
    # read as don't-care and their output rows are dropped by Pallas (every
    # row is computed independently, so garbage rows can't contaminate).
    out = pl.pallas_call(
        functools.partial(cnn_kernel, inv_n=1.0 / base_channel),
        out_shape=jax.ShapeDtypeStruct((B, ncp), jnp.bfloat16),
        grid=(num_tiles,),
        in_specs=[
            # Streamed per batch tile.
            pl.BlockSpec((tm, num_seq), lambda i: (i, 0)),
            # Weights / packed vectors: constant block index -> DMA'd once,
            # VMEM-resident across the whole grid.
            pl.BlockSpec(w1.shape, lambda i: (0, 0)),
            pl.BlockSpec(w2.shape, lambda i: (0, 0)),
            pl.BlockSpec(w3.shape, lambda i: (0, 0)),
            pl.BlockSpec(vecs.shape, lambda i: (0, 0)),
            pl.BlockSpec(b3.shape, lambda i: (0, 0)),
        ],
        out_specs=pl.BlockSpec((tm, ncp), lambda i: (i, 0)),
        compiler_params=pltpu.CompilerParams(
            dimension_semantics=("parallel",)),
    )(x, w1, w2, w3, vecs, b3)

    # Cheap bf16 column slice back to the true class count. Callers that can
    # consume the padded 128-lane slab directly should skip this.
    return out[:, :num_class]


def init_params(key, num_seq, base_channel, num_class):
    """Deterministic synthetic init (PyTorch-style uniform fan-in bounds),
    padded lane-dense for the kernel."""
    ks = jax.random.split(key, 6)
    C = base_channel
    c_pad = _round_up(max(C, 128), 128)
    ncp = _round_up(max(num_class, 128), 128)

    def lin(kw, kb, fan_in, fan_out):
        bound = 1.0 / math.sqrt(fan_in)
        # Stored as (in, out) so the kernel does x @ W (== x @ W_pt.T).
        w = jax.random.uniform(kw, (fan_in, fan_out), jnp.float32, -bound, bound)
        b = jax.random.uniform(kb, (fan_out,), jnp.float32, -bound, bound)
        return w, b

    w1, b1 = lin(ks[0], ks[1], num_seq, C)
    w2, b2 = lin(ks[2], ks[3], C, C)
    w3, b3 = lin(ks[4], ks[5], C, num_class)

    # Zero-pad everything so pad lanes stay exactly 0 through LN / LeakyReLU
    # and never contaminate downstream matmuls.
    w1p = jnp.zeros((num_seq, c_pad), jnp.float32).at[:, :C].set(w1)
    w2p = jnp.zeros((c_pad, c_pad), jnp.float32).at[:C, :C].set(w2)
    w3p = jnp.zeros((c_pad, ncp), jnp.float32).at[:C, :num_class].set(w3)
    b3p = jnp.zeros((1, ncp), jnp.float32).at[0, :num_class].set(b3)

    # Packed per-channel vectors (one (8, c_pad) f32 slab):
    # 0=b1, 1=gamma1, 2=beta1, 3=b2, 4=gamma2, 5=beta2, 6=lane mask, 7=unused.
    # LayerNorm affine uses PyTorch default init (gamma=1, beta=0) on true
    # lanes; pad lanes are forced to gamma=0 / beta=0.
    mask = (jnp.arange(c_pad) < C).astype(jnp.float32)
    vecs = jnp.zeros((8, c_pad), jnp.float32)
    vecs = vecs.at[0, :C].set(b1)
    vecs = vecs.at[1].set(mask)   # gamma1
    vecs = vecs.at[3, :C].set(b2)
    vecs = vecs.at[4].set(mask)   # gamma2
    vecs = vecs.at[6].set(mask)   # variance mask

    return (w1p.astype(jnp.bfloat16),
            w2p.astype(jnp.bfloat16),
            w3p.astype(jnp.bfloat16),
            vecs,   # f32: bias / LN affine / mask math stays f32
            b3p)    # f32: added after f32 accumulation


def reference_forward(x, params, *, base_channel, num_class):
    """Full-f32, two-pass-LayerNorm reference on the same (bf16-stored)
    weights -- i.e. the PyTorch module's math, independent of the kernel's
    mixed-precision recipe."""
    w1, w2, w3, vecs, b3 = params
    C = base_channel
    w1 = w1[:, :C].astype(jnp.float32)
    w2 = w2[:C, :C].astype(jnp.float32)
    w3 = w3[:C, :num_class].astype(jnp.float32)
    b1, g1, be1 = vecs[0, :C], vecs[1, :C], vecs[2, :C]
    b2, g2, be2 = vecs[3, :C], vecs[4, :C], vecs[5, :C]
    b3 = b3[0, :num_class]

    def ln(h, g, b):
        mean = jnp.mean(h, axis=-1, keepdims=True)
        var = jnp.mean((h - mean) ** 2, axis=-1, keepdims=True)
        return (h - mean) * jax.lax.rsqrt(var + LN_EPS) * g + b

    h = x.astype(jnp.float32) @ w1 + b1
    h = _leaky_relu(ln(h, g1, be1))
    h = h @ w2 + b2
    h = _leaky_relu(ln(h, g2, be2))
    return h @ w3 + b3


if __name__ == "__main__":
    # Small shapes consistent with the module's forward:
    #   x: (batch, num_seq) -> out: (batch, num_class)
    batch = 16
    num_seq = 128
    base_channel = 32
    num_class = 24

    key = jax.random.PRNGKey(0)
    kx, kp = jax.random.split(key)
    x = jax.random.normal(kx, (batch, num_seq), jnp.float32)
    params = init_params(kp, num_seq, base_channel, num_class)

    out = cnn_forward(x, params, num_class=num_class, base_channel=base_channel)
    out = jax.block_until_ready(out)

    ref = reference_forward(x, params, base_channel=base_channel,
                            num_class=num_class)
    assert out.shape == (batch, num_class), out.shape
    out32 = out.astype(jnp.float32)
    max_err = float(jnp.max(jnp.abs(out32 - ref)))
    assert jnp.allclose(out32, ref, atol=5e-2, rtol=5e-2), \
        f"max abs err {max_err}"

    print("KERNEL_OK")
</pallas_src>

<mosaic_0001>
module attributes {stable_mosaic.version = 11 : i64} {
  func.func @cnn_kernel(%arg0: i32, %arg1: memref<16x128xf32, #tpu.memory_space<vmem>>, %arg2: memref<128x128xbf16, #tpu.memory_space<vmem>>, %arg3: memref<128x128xbf16, #tpu.memory_space<vmem>>, %arg4: memref<128x128xbf16, #tpu.memory_space<vmem>>, %arg5: memref<8x128xf32, #tpu.memory_space<vmem>>, %arg6: memref<1x128xf32, #tpu.memory_space<vmem>>, %arg7: memref<16x128xbf16, #tpu.memory_space<vmem>>) attributes {dimension_semantics = [#tpu.dimension_semantics<parallel>], iteration_bounds = array<i64: 1>, scalar_prefetch = 0 : i64, scratch_operands = 0 : i64, tpu.core_type = #tpu.core_type<tc>, window_params = [{transform_indices = @transform_0, window_bounds = array<i64: 16, 128>}, {pipeline_mode = #tpu.pipeline_mode<synchronous>, transform_indices = @transform_1, window_bounds = array<i64: 128, 128>}, {pipeline_mode = #tpu.pipeline_mode<synchronous>, transform_indices = @transform_2, window_bounds = array<i64: 128, 128>}, {pipeline_mode = #tpu.pipeline_mode<synchronous>, transform_indices = @transform_3, window_bounds = array<i64: 128, 128>}, {pipeline_mode = #tpu.pipeline_mode<synchronous>, transform_indices = @transform_4, window_bounds = array<i64: 8, 128>}, {pipeline_mode = #tpu.pipeline_mode<synchronous>, transform_indices = @transform_5, window_bounds = array<i64: 1, 128>}, {transform_indices = @transform_6, window_bounds = array<i64: 16, 128>}]} {
    %c0 = arith.constant 0 : index
    %c0_0 = arith.constant 0 : index
    %0 = vector.load %arg5[%c0, %c0_0] : memref<8x128xf32, #tpu.memory_space<vmem>>, vector<8x128xf32>
    %1 = vector.extract_strided_slice %0 {offsets = [0, 0], sizes = [1, 128], strides = [1, 1]} : vector<8x128xf32> to vector<1x128xf32>
    %2 = vector.extract_strided_slice %0 {offsets = [1, 0], sizes = [1, 128], strides = [1, 1]} : vector<8x128xf32> to vector<1x128xf32>
    %3 = vector.extract_strided_slice %0 {offsets = [2, 0], sizes = [1, 128], strides = [1, 1]} : vector<8x128xf32> to vector<1x128xf32>
    %4 = vector.extract_strided_slice %0 {offsets = [3, 0], sizes = [1, 128], strides = [1, 1]} : vector<8x128xf32> to vector<1x128xf32>
    %5 = vector.extract_strided_slice %0 {offsets = [4, 0], sizes = [1, 128], strides = [1, 1]} : vector<8x128xf32> to vector<1x128xf32>
    %6 = vector.extract_strided_slice %0 {offsets = [5, 0], sizes = [1, 128], strides = [1, 1]} : vector<8x128xf32> to vector<1x128xf32>
    %7 = vector.extract_strided_slice %0 {offsets = [6, 0], sizes = [1, 128], strides = [1, 1]} : vector<8x128xf32> to vector<1x128xf32>
    %c0_1 = arith.constant 0 : index
    %c0_2 = arith.constant 0 : index
    %8 = vector.load %arg1[%c0_1, %c0_2] : memref<16x128xf32, #tpu.memory_space<vmem>>, vector<16x128xf32>
    %9 = arith.truncf %8 : vector<16x128xf32> to vector<16x128xbf16>
    %c0_3 = arith.constant 0 : index
    %c0_4 = arith.constant 0 : index
    %10 = vector.load %arg2[%c0_3, %c0_4] : memref<128x128xbf16, #tpu.memory_space<vmem>>, vector<128x128xbf16>
    %cst = arith.constant dense<0.000000e+00> : vector<16x128xf32>
    %11 = tpu.matmul %9, %10, %cst {dimension_numbers = #tpu.dot_dimension_numbers<[1], [0], [0], [1], [0, 0, 1, 1], [], []>} : vector<16x128xbf16>, vector<128x128xbf16>, vector<16x128xf32> -> vector<16x128xf32>
    %12 = vector.broadcast %1 : vector<1x128xf32> to vector<16x128xf32>
    %13 = arith.addf %11, %12 : vector<16x128xf32>
    %cst_5 = arith.constant dense<0.000000e+00> : vector<16xf32>
    %14 = vector.multi_reduction <add>, %13, %cst_5 [1] : vector<16x128xf32> to vector<16xf32>
    %15 = vector.shape_cast %14 : vector<16xf32> to vector<16x1xf32>
    %cst_6 = arith.constant 3.125000e-02 : f32
    %16 = vector.broadcast %cst_6 : f32 to vector<16x1xf32>
    %17 = arith.mulf %15, %16 : vector<16x1xf32>
    %18 = vector.broadcast %17 : vector<16x1xf32> to vector<16x128xf32>
    %19 = arith.subf %13, %18 : vector<16x128xf32>
    %20 = vector.broadcast %7 : vector<1x128xf32> to vector<16x128xf32>
    %21 = arith.mulf %19, %20 : vector<16x128xf32>
    %22 = arith.mulf %21, %21 : vector<16x128xf32>
    %cst_7 = arith.constant dense<0.000000e+00> : vector<16xf32>
    %23 = vector.multi_reduction <add>, %22, %cst_7 [1] : vector<16x128xf32> to vector<16xf32>
    %24 = vector.shape_cast %23 : vector<16xf32> to vector<16x1xf32>
    %cst_8 = arith.constant 3.125000e-02 : f32
    %25 = vector.broadcast %cst_8 : f32 to vector<16x1xf32>
    %26 = arith.mulf %24, %25 : vector<16x1xf32>
    %cst_9 = arith.constant 9.99999974E-6 : f32
    %27 = vector.broadcast %cst_9 : f32 to vector<16x1xf32>
    %28 = arith.addf %26, %27 : vector<16x1xf32>
    %29 = math.rsqrt %28 : vector<16x1xf32>
    %30 = vector.broadcast %29 : vector<16x1xf32> to vector<16x128xf32>
    %31 = arith.mulf %21, %30 : vector<16x128xf32>
    %32 = vector.broadcast %2 : vector<1x128xf32> to vector<16x128xf32>
    %33 = arith.mulf %31, %32 : vector<16x128xf32>
    %34 = vector.broadcast %3 : vector<1x128xf32> to vector<16x128xf32>
    %35 = arith.addf %33, %34 : vector<16x128xf32>
    %cst_10 = arith.constant 0.000000e+00 : f32
    %36 = vector.broadcast %cst_10 : f32 to vector<16x128xf32>
    %37 = arith.cmpf oge, %35, %36 : vector<16x128xf32>
    %cst_11 = arith.constant 0.00999999977 : f32
    %38 = vector.broadcast %cst_11 : f32 to vector<16x128xf32>
    %39 = arith.mulf %38, %35 : vector<16x128xf32>
    %40 = arith.select %37, %35, %39 : vector<16x128xi1>, vector<16x128xf32>
    %41 = arith.truncf %40 : vector<16x128xf32> to vector<16x128xbf16>
    %c0_12 = arith.constant 0 : index
    %c0_13 = arith.constant 0 : index
    %42 = vector.load %arg3[%c0_12, %c0_13] : memref<128x128xbf16, #tpu.memory_space<vmem>>, vector<128x128xbf16>
    %cst_14 = arith.constant dense<0.000000e+00> : vector<16x128xf32>
    %43 = tpu.matmul %41, %42, %cst_14 {dimension_numbers = #tpu.dot_dimension_numbers<[1], [0], [0], [1], [0, 0, 1, 1], [], []>} : vector<16x128xbf16>, vector<128x128xbf16>, vector<16x128xf32> -> vector<16x128xf32>
    %44 = vector.broadcast %4 : vector<1x128xf32> to vector<16x128xf32>
    %45 = arith.addf %43, %44 : vector<16x128xf32>
    %cst_15 = arith.constant dense<0.000000e+00> : vector<16xf32>
    %46 = vector.multi_reduction <add>, %45, %cst_15 [1] : vector<16x128xf32> to vector<16xf32>
    %47 = vector.shape_cast %46 : vector<16xf32> to vector<16x1xf32>
    %cst_16 = arith.constant 3.125000e-02 : f32
    %48 = vector.broadcast %cst_16 : f32 to vector<16x1xf32>
    %49 = arith.mulf %47, %48 : vector<16x1xf32>
    %50 = vector.broadcast %49 : vector<16x1xf32> to vector<16x128xf32>
    %51 = arith.subf %45, %50 : vector<16x128xf32>
    %52 = vector.broadcast %7 : vector<1x128xf32> to vector<16x128xf32>
    %53 = arith.mulf %51, %52 : vector<16x128xf32>
    %54 = arith.mulf %53, %53 : vector<16x128xf32>
    %cst_17 = arith.constant dense<0.000000e+00> : vector<16xf32>
    %55 = vector.multi_reduction <add>, %54, %cst_17 [1] : vector<16x128xf32> to vector<16xf32>
    %56 = vector.shape_cast %55 : vector<16xf32> to vector<16x1xf32>
    %cst_18 = arith.constant 3.125000e-02 : f32
    %57 = vector.broadcast %cst_18 : f32 to vector<16x1xf32>
    %58 = arith.mulf %56, %57 : vector<16x1xf32>
    %cst_19 = arith.constant 9.99999974E-6 : f32
    %59 = vector.broadcast %cst_19 : f32 to vector<16x1xf32>
    %60 = arith.addf %58, %59 : vector<16x1xf32>
    %61 = math.rsqrt %60 : vector<16x1xf32>
    %62 = vector.broadcast %61 : vector<16x1xf32> to vector<16x128xf32>
    %63 = arith.mulf %53, %62 : vector<16x128xf32>
    %64 = vector.broadcast %5 : vector<1x128xf32> to vector<16x128xf32>
    %65 = arith.mulf %63, %64 : vector<16x128xf32>
    %66 = vector.broadcast %6 : vector<1x128xf32> to vector<16x128xf32>
    %67 = arith.addf %65, %66 : vector<16x128xf32>
    %cst_20 = arith.constant 0.000000e+00 : f32
    %68 = vector.broadcast %cst_20 : f32 to vector<16x128xf32>
    %69 = arith.cmpf oge, %67, %68 : vector<16x128xf32>
    %cst_21 = arith.constant 0.00999999977 : f32
    %70 = vector.broadcast %cst_21 : f32 to vector<16x128xf32>
    %71 = arith.mulf %70, %67 : vector<16x128xf32>
    %72 = arith.select %69, %67, %71 : vector<16x128xi1>, vector<16x128xf32>
    %73 = arith.truncf %72 : vector<16x128xf32> to vector<16x128xbf16>
    %c0_22 = arith.constant 0 : index
    %c0_23 = arith.constant 0 : index
    %74 = vector.load %arg4[%c0_22, %c0_23] : memref<128x128xbf16, #tpu.memory_space<vmem>>, vector<128x128xbf16>
    %cst_24 = arith.constant dense<0.000000e+00> : vector<16x128xf32>
    %75 = tpu.matmul %73, %74, %cst_24 {dimension_numbers = #tpu.dot_dimension_numbers<[1], [0], [0], [1], [0, 0, 1, 1], [], []>} : vector<16x128xbf16>, vector<128x128xbf16>, vector<16x128xf32> -> vector<16x128xf32>
    %c0_25 = arith.constant 0 : index
    %c0_26 = arith.constant 0 : index
    %76 = vector.load %arg6[%c0_25, %c0_26] : memref<1x128xf32, #tpu.memory_space<vmem>>, vector<1x128xf32>
    %77 = vector.broadcast %76 : vector<1x128xf32> to vector<16x128xf32>
    %78 = arith.addf %75, %77 : vector<16x128xf32>
    %79 = arith.truncf %78 : vector<16x128xf32> to vector<16x128xbf16>
    %c0_27 = arith.constant 0 : index
    %c0_28 = arith.constant 0 : index
    %80 = vector.load %arg7[%c0_27, %c0_28] : memref<16x128xbf16, #tpu.memory_space<vmem>>, vector<16x128xbf16>
    tpu.vector_store %arg7[%c0_27, %c0_28], %79 {strides = array<i32>} : memref<16x128xbf16, #tpu.memory_space<vmem>>, vector<16x128xbf16>,
    return
  }
  func.func @transform_0(%arg0: i32) -> (i32, i32) {
    %c0_i32 = arith.constant 0 : i32
    %c0_i32_0 = arith.constant 0 : i32
    return %arg0, %c0_i32 : i32, i32
  }
  func.func @transform_1(%arg0: i32) -> (i32, i32) {
    %c0_i32 = arith.constant 0 : i32
    %c0_i32_0 = arith.constant 0 : i32
    %c0_i32_1 = arith.constant 0 : i32
    return %c0_i32, %c0_i32_0 : i32, i32
  }
  func.func @transform_2(%arg0: i32) -> (i32, i32) {
    %c0_i32 = arith.constant 0 : i32
    %c0_i32_0 = arith.constant 0 : i32
    %c0_i32_1 = arith.constant 0 : i32
    return %c0_i32, %c0_i32_0 : i32, i32
  }
  func.func @transform_3(%arg0: i32) -> (i32, i32) {
    %c0_i32 = arith.constant 0 : i32
    %c0_i32_0 = arith.constant 0 : i32
    %c0_i32_1 = arith.constant 0 : i32
    return %c0_i32, %c0_i32_0 : i32, i32
  }
  func.func @transform_4(%arg0: i32) -> (i32, i32) {
    %c0_i32 = arith.constant 0 : i32
    %c0_i32_0 = arith.constant 0 : i32
    %c0_i32_1 = arith.constant 0 : i32
    return %c0_i32, %c0_i32_0 : i32, i32
  }
  func.func @transform_5(%arg0: i32) -> (i32, i32) {
    %c0_i32 = arith.constant 0 : i32
    %c0_i32_0 = arith.constant 0 : i32
    %c0_i32_1 = arith.constant 0 : i32
    return %c0_i32, %c0_i32_0 : i32, i32
  }
  func.func @transform_6(%arg0: i32) -> (i32, i32) {
    %c0_i32 = arith.constant 0 : i32
    %c0_i32_0 = arith.constant 0 : i32
    return %arg0, %c0_i32 : i32, i32
  }
}

</mosaic_0001>

<bundles_post_ra>
// kernel: cnn_forward.1
= control target key start
LH: loop header
LB: loop body
LE: loop exit
PB: predicated region body
PF: predicated region fallthrough
CT: control target
= control target key end

     0   :  { %11 = vsyncpa [#allocation3], 0  ;;  %s1000_s0 = inlined_call_operand.hbm [shape: f32[16,128], index: 0, kind: input, shape index: {}]   ;;  %s1001_s1 = inlined_call_operand.hbm [shape: bf16[128,128], index: 1, kind: input, shape index: {}]   ;;  %s1002_s2 = inlined_call_operand.hbm [shape: bf16[128,128], index: 2, kind: input, shape index: {}]   ;;  %s1003_s3 = inlined_call_operand.hbm [shape: bf16[128,128], index: 3, kind: input, shape index: {}]   ;;  %s1004_s4 = inlined_call_operand.vmem [shape: f32[8,128], index: 4, kind: input, shape index: {}]   ;;  %s1005_s5 = inlined_call_operand.vmem [shape: f32[1,128], index: 5, kind: input, shape index: {}]   ;;  %s1006_s6 = inlined_call_operand.hbm [shape: bf16[16,128], index: 6, kind: output, shape index: {}]  }
   0x1   :  { %12 = vsyncpa [#allocation6], 0 }
   0x2   :  { %13 = vsyncpa [#allocation9], 0 }
   0x3   :  { %14 = vsyncpa [#allocation4], 0  ;;  %s815_s21 = smov [#allocation5]   ;;  %s697_s25 = scalar_lea.hbm %s1001_s1, 1024 }
   0x4   :  { %s32_s22 = sshll.u32 %s815_s21, 4  ;;  %p698_p0 = scmp.ne.s32.totalorder %s1001_s1, %s697_s25  ;;  %s33_s22 = int_to_ptr.vmem [resolvable:$true] %s32_s22 }
   0x5   :  { %p701_p1 = scmp.lt.u32.totalorder %s697_s25, %s1001_s1 }
   0x7   :  { %p703_p2 = pnand %p701_p1, %p698_p0 }
   0x9   :  { %706 = shalt.err (!%p703_p2)
}
   0xa   :  { %s707_s30 = scalar_lea.vmem %s33_s22, 1024  ;;  %p712_p4 = scmp.lt.s32.totalorder %s33_s22, %s33_s22 }
   0xb   :  { %p708_p3 = scmp.ne.s32.totalorder %s33_s22, %s707_s30  ;;  %p713_p5 = scmp.lt.s32.totalorder %s707_s30, %s707_s30 }
   0xd   :  { %p714_p6 = por %p713_p5, %p712_p4 }
   0xf   :  { %p715_p7 = pnand %p714_p6, %p708_p3 }
  0x11   :  { %718 = shalt.err (!%p715_p7)
}
  0x12   :  { %s816_s7 = smov 64   ;;  %s817_s8 = smov 4  }
  0x13   :  { %38 = dma.hbm_to_vmem [thread:$0]  %s1001_s1, 1024, %s33_s22, [#allocation6], %s816_s7, %s816_s7, %s817_s8  }
  0x14   :  { %s818_s11 = smov [#allocation2]   ;;  %s719_s15 = scalar_lea.hbm %s1000_s0, 256 }
  0x15   :  { %s20_s12 = sshll.u32 %s818_s11, 4  ;;  %p720_p8 = scmp.ne.s32.totalorder %s1000_s0, %s719_s15  ;;  %s21_s12 = int_to_ptr.vmem [resolvable:$true] %s20_s12 }
  0x16   :  { %p723_p9 = scmp.lt.u32.totalorder %s719_s15, %s1000_s0 }
  0x18   :  { %p725_p10 = pnand %p723_p9, %p720_p8 }
  0x1a   :  { %728 = shalt.err (!%p725_p10)
}
  0x1b   :  { %s729_s20 = scalar_lea.vmem %s21_s12, 256  ;;  %p734_p12 = scmp.lt.s32.totalorder %s21_s12, %s21_s12 }
  0x1c   :  { %p730_p11 = scmp.ne.s32.totalorder %s21_s12, %s729_s20  ;;  %p735_p13 = scmp.lt.s32.totalorder %s729_s20, %s729_s20 }
  0x1e   :  { %p736_p0 = por %p735_p13, %p734_p12 }
  0x20   :  { %p737_p1 = pnand %p736_p0, %p730_p11 }
  0x22   :  { %740 = shalt.err (!%p737_p1)
}
  0x23   :  { %s819_s1 = smov 128   ;;  %s820_s21 = smov 8  }
  0x24   :  { %26 = dma.hbm_to_vmem [thread:$0]  %s1000_s0, 256, %s21_s12, [#allocation3], %s819_s1, %s819_s1, %s820_s21  }
  0x25   :  { %s821_s24 = smov [#allocation7]   ;;  %s822_s26 = smov [#allocation8]  }
  0x26   :  { %s44_s25 = sshll.u32 %s821_s24, 4  ;;  %s56_s27 = sshll.u32 %s822_s26, 4  ;;  %s45_s25 = int_to_ptr.vmem [resolvable:$true] %s44_s25  ;;  %s888_s27 = int_to_ptr.vmem [resolvable:$true] %s56_s27 }
  0x27   :  { %s741_s30 = scalar_lea.hbm %s1002_s2, 1024 }
  0x28   :  { %p742_p2 = scmp.ne.s32.totalorder %s1002_s2, %s741_s30  ;;  %p745_p3 = scmp.lt.u32.totalorder %s741_s30, %s1002_s2 }
  0x2a   :  { %p747_p4 = pnand %p745_p3, %p742_p2 }
  0x2c   :  { %750 = shalt.err (!%p747_p4)
}
  0x2d   :  { %s751_s0 = scalar_lea.vmem %s45_s25, 1024  ;;  %p756_p6 = scmp.lt.s32.totalorder %s45_s25, %s45_s25 }
  0x2e   :  { %p752_p5 = scmp.ne.s32.totalorder %s45_s25, %s751_s0  ;;  %p757_p7 = scmp.lt.s32.totalorder %s751_s0, %s751_s0 }
  0x30   :  { %p758_p8 = por %p757_p7, %p756_p6 }
  0x32   :  { %p759_p9 = pnand %p758_p8, %p752_p5 }
  0x34   :  { %762 = shalt.err (!%p759_p9)
}
  0x35   :  { %50 = dma.hbm_to_vmem [thread:$0]  %s1002_s2, 1024, %s45_s25, [#allocation6], %s816_s7, %s816_s7, %s817_s8  }
  0x36   :  { %s763_s17 = scalar_lea.hbm %s1003_s3, 1024 }
  0x37   :  { %p764_p10 = scmp.ne.s32.totalorder %s1003_s3, %s763_s17  ;;  %p767_p11 = scmp.lt.u32.totalorder %s763_s17, %s1003_s3 }
  0x39   :  { %p769_p12 = pnand %p767_p11, %p764_p10 }
  0x3b   :  { %772 = shalt.err (!%p769_p12)
}
  0x3c   :  { %s773_s21 = scalar_lea.vmem %s888_s27, 1024  ;;  %p778_p0 = scmp.lt.s32.totalorder %s888_s27, %s888_s27 }
  0x3d   :  { %p774_p13 = scmp.ne.s32.totalorder %s888_s27, %s773_s21  ;;  %p779_p1 = scmp.lt.s32.totalorder %s773_s21, %s773_s21 }
  0x3f   :  { %p780_p2 = por %p779_p1, %p778_p0 }
  0x41   :  { %p781_p3 = pnand %p780_p2, %p774_p13 }
  0x43   :  { %784 = shalt.err (!%p781_p3)
}
  0x44   :  { %62 = dma.hbm_to_vmem [thread:$0]  %s1003_s3, 1024, %s888_s27, [#allocation9], %s816_s7, %s816_s7, %s817_s8  }
  0x45   :  { %807 = dma.done.wait [#allocation3], 256  }
  0x46   :  { %808 = vsyncadd [#allocation3], 4294967040 }
  0x47   :  { %809 = dma.done.wait [#allocation6], 2048  }
  0x48   :  { %810 = vsyncadd [#allocation6], 4294965248 }
  0x49   :  { %811 = dma.done.wait [#allocation9], 1024  }
  0x4a   :  { %812 = vsyncadd [#allocation9], 4294966272  ;;  %v823_v0 = vmov 0.0   ;;  %vm824_vm0 = vmmov 0   ;;  %v665_v1 = vld [vmem:[#allocation5] sm:$0xff]   ;;  %v666_v2 = vld [vmem:[#allocation5 + $0x8] sm:$0xff]   ;;  %v100_v12 = vlaneseq }
  0x4b   :  { %594 = vmatprep.subr.bf16.mxu0 %v823_v0  ;;  %610 = vmatprep.mubr.msk.bf16.mxu0 %vm824_vm0, %v823_v0  ;;  %v667_v3 = vld [vmem:[#allocation5 + $0x10] sm:$0xff]   ;;  %v668_v4 = vld [vmem:[#allocation5 + $0x18] sm:$0xff]   ;;  %v669_v5 = vld [vmem:[#allocation5 + $0x20] sm:$0xff]   ;;  %s825_s25 = smov [#allocation10]  }
  0x4c   :  { %614 = vmatprep.subr.bf16.mxu1 %v823_v0  ;;  %630 = vmatprep.mubr.msk.bf16.mxu1 %vm824_vm0, %v823_v0  ;;  %v670_v6 = vld [vmem:[#allocation5 + $0x28] sm:$0xff]   ;;  %v671_v7 = vld [vmem:[#allocation5 + $0x30] sm:$0xff]   ;;  %v672_v8 = vld [vmem:[#allocation5 + $0x38] sm:$0xff]   ;;  %v941_v13 = vshrl.u32 %v100_v12, 7  ;;  %s519_s26 = sshll.u32 %s825_s25, 4  ;;  %s520_s26 = int_to_ptr.vmem [resolvable:$true] %s519_s26 }
  0x4d   :  { %595 = vmatpush3.bf16.msra.mxu0 %v665_v1  ;;  %v81_v9 = vld [vmem:[#allocation2] sm:$0xff]  ;;  %v82_v10 = vld [vmem:[#allocation2 + $0x8] sm:$0xff]  ;;  %v673_v23 = vld [vmem:[#allocation7] sm:$0xff]   ;;  %s785_s27 = scalar_lea.vmem %s520_s26, 128  ;;  %p790_p5 = scmp.lt.s32.totalorder %s520_s26, %s520_s26 }
  0x4e   :  { %596 = vmatprep.subr.bf16.mxu0 %v823_v0  ;;  %v83_v11 = vpack.c.bf16 %v82_v10, %v81_v9  ;;  %v102_v14 = vsub.s32 0, %v941_v13  ;;  %v947_v15 = vld [vmem:[%s1004_s4] sm:$0xff]  ;;  %615 = vmatpush3.bf16.msra.mxu1 %v673_v23  ;;  %v203_v24 = vsub.s32 6, %v941_v13  ;;  %v674_v36 = vld [vmem:[#allocation7 + $0x8] sm:$0xff]   ;;  %v676_v38 = vld [vmem:[#allocation7 + $0x18] sm:$0xff]   ;;  %v223_v49 = vsub.s32 1, %v941_v13  ;;  %p786_p4 = scmp.ne.s32.totalorder %s520_s26, %s785_s27  ;;  %p791_p6 = scmp.lt.s32.totalorder %s785_s27, %s785_s27 }
  0x4f   :  { %616 = vmatprep.subr.bf16.mxu1 %v823_v0  ;;  %v675_v37 = vld [vmem:[#allocation7 + $0x10] sm:$0xff]   ;;  %v677_v39 = vld [vmem:[#allocation7 + $0x20] sm:$0xff]   ;;  %v678_v40 = vld [vmem:[#allocation7 + $0x28] sm:$0xff]   ;;  %v229_v50 = vsub.s32 2, %v941_v13 }
  0x50   :  { %v103_v16 = vrot.slane %v947_v15, %v102_v14  ;;  %v953_v27 = vrot.slane %v947_v15, %v203_v24  ;;  %v679_v41 = vld [vmem:[#allocation7 + $0x30] sm:$0xff]   ;;  %v680_v42 = vld [vmem:[#allocation7 + $0x38] sm:$0xff]   ;;  %v224_v51 = vrot.slane %v947_v15, %v223_v49  ;;  %v682_v24 = vld [vmem:[#allocation8 + $0x8] sm:$0xff]   ;;  %p792_p7 = por %p791_p6, %p790_p5 }
  0x51   :  { %597 = vmatpush3.bf16.msra.mxu0 %v666_v2  ;;  %v230_v54 = vrot.slane %v947_v15, %v229_v50 }
  0x52   :  { %598 = vmatprep.subr.bf16.mxu0 %v823_v0  ;;  %617 = vmatpush3.bf16.msra.mxu1 %v674_v36  ;;  %p793_p8 = pnand %p792_p7, %p786_p4 }
  0x53   :  { %618 = vmatprep.subr.bf16.mxu1 %v823_v0 }
  0x55   :  { %599 = vmatpush3.bf16.msra.mxu0 %v667_v3  ;;  %v258_v3 = vsub.s32 3, %v941_v13 }
  0x56   :  { %600 = vmatprep.subr.bf16.mxu0 %v823_v0  ;;  %619 = vmatpush3.bf16.msra.mxu1 %v675_v37  ;;  %v375_v37 = vsub.s32 4, %v941_v13 }
  0x57   :  { %620 = vmatprep.subr.bf16.mxu1 %v823_v0 }
  0x59   :  { %601 = vmatpush3.bf16.msra.mxu0 %v668_v4  ;;  %v259_v4 = vrot.slane %v947_v15, %v258_v3 }
  0x5a   :  { %602 = vmatprep.subr.bf16.mxu0 %v823_v0  ;;  %621 = vmatpush3.bf16.msra.mxu1 %v676_v38  ;;  %v381_v38 = vsub.s32 5, %v941_v13  ;;  %v549_v13 = vld [vmem:[%s1005_s5] ss:$0 sm:$0xff] }
  0x5b   :  { %622 = vmatprep.subr.bf16.mxu1 %v823_v0 }
  0x5d   :  { %603 = vmatpush3.bf16.msra.mxu0 %v669_v5 }
  0x5e   :  { %604 = vmatprep.subr.bf16.mxu0 %v823_v0  ;;  %623 = vmatpush3.bf16.msra.mxu1 %v677_v39  ;;  %v376_v39 = vrot.slane %v947_v15, %v375_v37 }
  0x5f   :  { %624 = vmatprep.subr.bf16.mxu1 %v823_v0 }
  0x61   :  { %605 = vmatpush3.bf16.msra.mxu0 %v670_v6 }
  0x62   :  { %606 = vmatprep.subr.bf16.mxu0 %v823_v0  ;;  %625 = vmatpush3.bf16.msra.mxu1 %v678_v40 }
  0x63   :  { %626 = vmatprep.subr.bf16.mxu1 %v823_v0 }
  0x65   :  { %607 = vmatpush3.bf16.msra.mxu0 %v671_v7 }
  0x66   :  { %608 = vmatprep.subr.bf16.mxu0 %v823_v0  ;;  %627 = vmatpush3.bf16.msra.mxu1 %v679_v41 }
  0x67   :  { %628 = vmatprep.subr.bf16.mxu1 %v823_v0 }
  0x69   :  { %609 = vmatpush3.bf16.msra.mxu0 %v672_v8 }
  0x6a   :  { %634 = vmatprep.subr.bf16.mxu0 %v823_v0  ;;  %629 = vmatpush3.bf16.msra.mxu1 %v680_v42  ;;  %v382_v42 = vrot.slane %v947_v15, %v381_v38 }
  0x6c   :  { %611 = vmatmul.mubr.bf16.vlgmr.msra.gmra.mrb[0].mxu0 %v83_v11  ;;  %v681_v11 = vld [vmem:[#allocation8] sm:$0xff]  }
  0x6d   :  { %650 = vmatprep.mubr.msk.bf16.mxu0 %vm824_vm0, %v823_v0  ;;  %635 = vmatpush3.bf16.msra.mxu0 %v681_v11 }
  0x6e   :  { %636 = vmatprep.subr.bf16.mxu0 %v823_v0 }
  0x71   :  { %637 = vmatpush3.bf16.msra.mxu0 %v682_v24 }
  0x72   :  { %638 = vmatprep.subr.bf16.mxu0 %v823_v0 }
 0x13f   :  { %v186_v17 = vpop.f32.mrb[0].mxu0 }
 0x140   :  { %v187_v18 = vadd.f32 %v186_v17, %v103_v16  ;;  %v612_v19 = vpop.f32.mrb[1].mxu0 }
 0x141   :  { %v189_v20 = vpop.f32.mrb[2].mxu0 }
 0x142   :  { %v613_v21 = vpop.f32.mrb[3].mxu0  ;;  %193 = vadd.xlane.f32.xlu0 %v187_v18  ;;  %v190_v22 = vadd.f32 %v189_v20, %v103_v16 }
 0x146   :  { %195 = vadd.xlane.f32.xlu0 %v190_v22 }
 0x1cf   :  { %v194_v25 = vpop.xlane.xlu0 %193 }
 0x1d0   :  { %v197_v26 = vmul.f32 0.03125, %v194_v25  ;;  %v683_v25 = vld [vmem:[#allocation8 + $0x10] sm:$0xff]  }
 0x1d1   :  { %639 = vmatpush3.bf16.msra.mxu0 %v683_v25 }
 0x1d2   :  { %v199_v28 = vsub.f32 %v187_v18, %v197_v26  ;;  %640 = vmatprep.subr.bf16.mxu0 %v823_v0  ;;  %v684_v26 = vld [vmem:[#allocation8 + $0x18] sm:$0xff]  }
 0x1d3   :  { %v196_v29 = vpop.xlane.xlu0 %195 }
 0x1d4   :  { %v198_v30 = vmul.f32 0.03125, %v196_v29  ;;  %v205_v31 = vmul.f32 %v953_v27, %v199_v28  ;;  %v685_v28 = vld [vmem:[#allocation8 + $0x20] sm:$0xff]   ;;  %v687_v29 = vld [vmem:[#allocation8 + $0x30] sm:$0xff]  }
 0x1d5   :  { %641 = vmatpush3.bf16.msra.mxu0 %v684_v26 }
 0x1d6   :  { %v200_v32 = vsub.f32 %v190_v22, %v198_v30  ;;  %v207_v33 = vmul.f32 %v205_v31, %v205_v31  ;;  %642 = vmatprep.subr.bf16.mxu0 %v823_v0  ;;  %v688_v30 = vld [vmem:[#allocation8 + $0x38] sm:$0xff]  }
 0x1d8   :  { %209 = vadd.xlane.f32.xlu1 %v207_v33  ;;  %v206_v34 = vmul.f32 %v953_v27, %v200_v32 }
 0x1d9   :  { %643 = vmatpush3.bf16.msra.mxu0 %v685_v28 }
 0x1da   :  { %v208_v35 = vmul.f32 %v206_v34, %v206_v34  ;;  %644 = vmatprep.subr.bf16.mxu0 %v823_v0 }
 0x1dc   :  { %211 = vadd.xlane.f32.xlu1 %v208_v35 }
 0x265   :  { %v210_v43 = vpop.xlane.xlu1 %209 }
 0x266   :  { %v213_v44 = vmul.f32 0.03125, %v210_v43 }
 0x268   :  { %v215_v45 = vadd.f32 1e-05, %v213_v44 }
 0x269   :  { %v212_v46 = vpop.xlane.xlu1 %211 }
 0x26a   :  { %689 = vrsqrt.f32 %v215_v45  ;;  %v214_v47 = vmul.f32 0.03125, %v212_v46 }
 0x26c   :  { %v216_v48 = vadd.f32 1e-05, %v214_v47 }
 0x26e   :  { %691 = vrsqrt.f32 %v216_v48 }
 0x274   :  { %v690_v52 = vpop.eup %689 }
 0x275   :  { %v219_v53 = vmul.f32 %v690_v52, %v205_v31 }
 0x277   :  { %v225_v55 = vmul.f32 %v224_v51, %v219_v53 }
 0x278   :  { %v692_v56 = vpop.eup %691 }
 0x279   :  { %v220_v57 = vmul.f32 %v692_v56, %v206_v34  ;;  %v231_v58 = vadd.f32 %v230_v54, %v225_v55 }
 0x27b   :  { %v226_v59 = vmul.f32 %v224_v51, %v220_v57  ;;  %v235_v61 = vmul.f32 0.01, %v231_v58  ;;  %vm233_vm1 = vcmp.ge.f32.partialorder %v231_v58, 0.0 }
 0x27d   :  { %v232_v60 = vadd.f32 %v230_v54, %v226_v59  ;;  %v237_v63 = vsel %vm233_vm1, %v231_v58, %v235_v61 }
 0x27f   :  { %vm234_vm2 = vcmp.ge.f32.partialorder %v232_v60, 0.0  ;;  %v236_v62 = vmul.f32 0.01, %v232_v60 }
 0x281   :  { %v238_v1 = vsel %vm234_vm2, %v232_v60, %v236_v62 }
 0x282   :  { %v239_v2 = vpack.c.bf16 %v238_v1, %v237_v63 }
 0x284   :  { %631 = vmatmul.mubr.bf16.vlgmr.msra.gmra.mrb[0].mxu1 %v239_v2 }
 0x357   :  { %v342_v5 = vpop.f32.mrb[0].mxu1 }
 0x358   :  { %v343_v6 = vadd.f32 %v342_v5, %v259_v4  ;;  %v632_v7 = vpop.f32.mrb[1].mxu1 }
 0x359   :  { %v345_v8 = vpop.f32.mrb[2].mxu1 }
 0x35a   :  { %v346_v9 = vadd.f32 %v345_v8, %v259_v4  ;;  %349 = vadd.xlane.f32.xlu0 %v343_v6  ;;  %v633_v10 = vpop.f32.mrb[3].mxu1 }
 0x35c   :  { %351 = vadd.xlane.f32.xlu1 %v346_v9 }
 0x3e7   :  { %v350_v12 = vpop.xlane.xlu0 %349 }
 0x3e8   :  { %v353_v14 = vmul.f32 0.03125, %v350_v12 }
 0x3e9   :  { %v352_v16 = vpop.xlane.xlu1 %351 }
 0x3ea   :  { %v355_v17 = vsub.f32 %v343_v6, %v353_v14  ;;  %v354_v18 = vmul.f32 0.03125, %v352_v16 }
 0x3ec   :  { %v356_v19 = vsub.f32 %v346_v9, %v354_v18  ;;  %v357_v20 = vmul.f32 %v355_v17, %v953_v27 }
 0x3ee   :  { %v359_v21 = vmul.f32 %v357_v20, %v357_v20  ;;  %v358_v22 = vmul.f32 %v356_v19, %v953_v27  ;;  %v686_v27 = vld [vmem:[#allocation8 + $0x28] sm:$0xff]  }
 0x3ef   :  { %645 = vmatpush3.bf16.msra.mxu0 %v686_v27 }
 0x3f0   :  { %361 = vadd.xlane.f32.xlu0 %v359_v21  ;;  %v360_v23 = vmul.f32 %v358_v22, %v358_v22  ;;  %646 = vmatprep.subr.bf16.mxu0 %v823_v0 }
 0x3f2   :  { %363 = vadd.xlane.f32.xlu1 %v360_v23 }
 0x3f3   :  { %647 = vmatpush3.bf16.msra.mxu0 %v687_v29 }
 0x3f4   :  { %648 = vmatprep.subr.bf16.mxu0 %v823_v0 }
 0x3f7   :  { %649 = vmatpush3.bf16.msra.mxu0 %v688_v30 }
 0x47d   :  { %v362_v31 = vpop.xlane.xlu0 %361 }
 0x47e   :  { %v365_v32 = vmul.f32 0.03125, %v362_v31 }
 0x47f   :  { %v364_v33 = vpop.xlane.xlu1 %363 }
 0x480   :  { %v367_v34 = vadd.f32 1e-05, %v365_v32  ;;  %v366_v35 = vmul.f32 0.03125, %v364_v33 }
 0x482   :  { %693 = vrsqrt.f32 %v367_v34  ;;  %v368_v36 = vadd.f32 1e-05, %v366_v35 }
 0x484   :  { %695 = vrsqrt.f32 %v368_v36 }
 0x48c   :  { %v694_v40 = vpop.eup %693 }
 0x48d   :  { %v371_v41 = vmul.f32 %v694_v40, %v357_v20 }
 0x48e   :  { %v696_v0 = vpop.eup %695 }
 0x48f   :  { %v377_v43 = vmul.f32 %v376_v39, %v371_v41  ;;  %v372_v44 = vmul.f32 %v696_v0, %v358_v22 }
 0x491   :  { %v378_v45 = vmul.f32 %v376_v39, %v372_v44  ;;  %v383_v46 = vadd.f32 %v382_v42, %v377_v43 }
 0x493   :  { %v384_v47 = vadd.f32 %v382_v42, %v378_v45  ;;  %v387_v48 = vmul.f32 0.01, %v383_v46  ;;  %vm385_vm3 = vcmp.ge.f32.partialorder %v383_v46, 0.0 }
 0x495   :  { %vm386_vm4 = vcmp.ge.f32.partialorder %v384_v47, 0.0  ;;  %v388_v49 = vmul.f32 0.01, %v384_v47  ;;  %v389_v50 = vsel %vm385_vm3, %v383_v46, %v387_v48 }
 0x497   :  { %v390_v51 = vsel %vm386_vm4, %v384_v47, %v388_v49 }
 0x498   :  { %v391_v52 = vpack.c.bf16 %v390_v51, %v389_v50 }
 0x49a   :  { %651 = vmatmul.mubr.bf16.vlgmr.msra.gmra.mrb[4].mxu0 %v391_v52 }
 0x56d   :  { %v497_v53 = vpop.f32.mrb[4].mxu0 }
 0x56e   :  { %v652_v15 = vpop.f32.mrb[5].mxu0  ;;  %v498_v55 = vadd.f32 %v549_v13, %v497_v53 }
 0x56f   :  { %v500_v54 = vpop.f32.mrb[6].mxu0 }
 0x570   :  { %v501_v56 = vadd.f32 %v549_v13, %v500_v54  ;;  %v653_v57 = vpop.f32.mrb[7].mxu0 }
 0x572   :  { %v565_v58 = vpack.c.bf16 %v501_v56, %v498_v55 }
 0x574   :  { %566 = vst [vmem:[#allocation10] sm:$0xff] %v565_v58  }
 0x575   :  { %796 = shalt.err (!%p793_p8)
}
 0x576   :  { %s797_s29 = scalar_lea.hbm %s1006_s6, 128 }
 0x577   :  { %p798_p9 = scmp.ne.s32.totalorder %s1006_s6, %s797_s29  ;;  %p801_p10 = scmp.lt.u32.totalorder %s797_s29, %s1006_s6 }
 0x579   :  { %p803_p11 = pnand %p801_p10, %p798_p9 }
 0x57b   :  { %806 = shalt.err (!%p803_p11)
}
 0x57c   :  { %525 = dma.vmem_to_hbm [thread:$0]  %s520_s26, 128, %s1006_s6, [#allocation4], %s816_s7, %s816_s7, %s817_s8  }
 0x57d   :  { %813 = dma.done.wait [#allocation4], 128  }
 0x57e   :  { %814 = vsyncadd [#allocation4], 4294967168 }
 0x57f   :  { %529 = vsyncpa [#allocation3], 1 }
 0x580   :  { %530 = vsyncpa [#allocation6], 1 }
 0x581   :  { %531 = vsyncpa [#allocation9], 1 }
 0x582   :  { %532 = vsyncpa [#allocation4], 1 }

</bundles_post_ra>
